<compile_context>
chip_gen: v7x
topology: tpu7x:2x2x1
jax: 0.10.0
libtpu: 0.0.40
codegen_flags: <defaults>
</compile_context>

<pallas_src>
import functools

import jax
import jax.numpy as jnp
from jax.experimental import pallas as pl
from jax.experimental.pallas import tpu as pltpu


# ----------------------------------------------------------------------------- kernels


def _scse_fused_kernel(x_ref, w1_ref, b1_ref, w2_ref, b2_ref, ws_ref, bs_ref, o_ref,
                       *, inv_hw):
    """Single-pass kernel. x block: (Nb, C, HWp), HWp on the lane axis."""
    # ---- cSE: global average pool (lane reduce) -> tiny FCs on VPU/XLU -> sigmoid.
    mean = jnp.sum(x_ref[...], axis=2, keepdims=True) * inv_hw          # (Nb, C, 1)
    z = jnp.sum(mean * w1_ref[...][None], axis=1, keepdims=True)        # (Nb, 1, Cr)
    z = jnp.maximum(z + b1_ref[...][None], 0.0)
    s = jnp.sum(z * w2_ref[...][None], axis=2, keepdims=True)           # (Nb, C, 1)
    s = jax.nn.sigmoid(s + b2_ref[...][None])                           # channel gate

    # ---- sSE: 1x1 conv C -> 1 per pixel (sublane reduce) -> sigmoid.
    q = jnp.sum(x_ref[...] * ws_ref[...][None], axis=1, keepdims=True) + bs_ref[0]
    q = jax.nn.sigmoid(q)                                               # (Nb, 1, HWp)

    # ---- fused combine: x * cSE + x * sSE == x * (s + q).
    o_ref[...] = x_ref[...] * (s + q)


def _scse_pool_gate_kernel(x_ref, w1_ref, b1_ref, w2_ref, b2_ref, s_ref, *, inv_hw):
    """Pass 1 of the tiled path: accumulate the per-channel sum over HW tiles, then
    compute the cSE channel gate on the last tile.  s_ref block: (1, C, 1)."""
    t = pl.program_id(1)

    @pl.when(t == 0)
    def _():
        s_ref[...] = jnp.zeros_like(s_ref)

    s_ref[...] += jnp.sum(x_ref[...], axis=2, keepdims=True)            # running sum

    @pl.when(t == pl.num_programs(1) - 1)
    def _():
        mean = s_ref[...] * inv_hw                                       # (1, C, 1)
        z = jnp.sum(mean * w1_ref[...][None], axis=1, keepdims=True)     # (1, 1, Cr)
        z = jnp.maximum(z + b1_ref[...][None], 0.0)
        s = jnp.sum(z * w2_ref[...][None], axis=2, keepdims=True)        # (1, C, 1)
        s_ref[...] = jax.nn.sigmoid(s + b2_ref[...][None])


def _scse_combine_kernel(x_ref, s_ref, ws_ref, bs_ref, o_ref):
    """Pass 2 of the tiled path: spatial gate + fused combine per HW tile."""
    q = jnp.sum(x_ref[...] * ws_ref[...][None], axis=1, keepdims=True) + bs_ref[0]
    q = jax.nn.sigmoid(q)                                               # (1, 1, T)
    o_ref[...] = x_ref[...] * (s_ref[...] + q)


# ----------------------------------------------------------------------------- wrapper


def _vmem_budget_bytes():
    """Device-aware VMEM budget (physical capacity minus ~8 MiB headroom)."""
    try:
        cap = int(pltpu.get_tpu_info().vmem_capacity_bytes)
    except Exception:
        cap = 64 * 1024 * 1024  # v7x-safe fallback
    return max(cap - 8 * 1024 * 1024, 16 * 1024 * 1024)


def scse_forward(x_nchw, params, *, force_tiled=False, hw_tile=None):
    """x_nchw: (N, C, H, W) float32. params: (w1, b1, w2, b2, ws, bs)."""
    w1, b1, w2, b2, ws, bs = params
    N, C, H, W = x_nchw.shape
    HW = H * W
    dtype = x_nchw.dtype
    itemsize = x_nchw.dtype.itemsize

    # NCHW -> (N, C, HW): contiguous reshape, no transpose / extra HBM pass.
    x = x_nchw.reshape(N, C, HW)

    # Lane-density guard: pad HW to a multiple of 128.  Zero padding drops out of the
    # channel sum (divide by the true HW) and of the output (sliced off below).
    HWp = ((HW + 127) // 128) * 128
    if HWp != HW:
        x = jnp.pad(x, ((0, 0), (0, 0), (0, HWp - HW)))
    inv_hw = 1.0 / float(HW)

    vmem_budget = _vmem_budget_bytes()
    plane_bytes = C * HWp * itemsize
    headroom = 4 << 20  # weights / semaphores / compiler scratch

    single_pass_ok = (not force_tiled) and (4 * plane_bytes <= vmem_budget - headroom)

    if single_pass_ok:
        # Batch several small planes per grid step (2-4 MiB blocks) to amortize
        # per-step overhead; x is read exactly once (optimal for a mem-bound kernel).
        target_bytes = 4 * 1024 * 1024
        nb = 1
        for cand in range(N, 0, -1):
            if N % cand:
                continue
            if (4 * cand * plane_bytes <= vmem_budget - headroom
                    and cand * plane_bytes <= target_bytes):
                nb = cand
                break
        vmem_limit = int(min(vmem_budget,
                             max(32 * 1024 * 1024, 4 * nb * plane_bytes + headroom)))

        kernel = functools.partial(_scse_fused_kernel, inv_hw=inv_hw)
        out = pl.pallas_call(
            kernel,
            out_shape=jax.ShapeDtypeStruct((N, C, HWp), dtype),
            grid_spec=pltpu.PrefetchScalarGridSpec(
                num_scalar_prefetch=0,
                grid=(N // nb,),
                in_specs=[
                    pl.BlockSpec((nb, C, HWp), lambda n: (n, 0, 0)),
                    pl.BlockSpec(w1.shape, lambda n: (0, 0)),
                    pl.BlockSpec(b1.shape, lambda n: (0, 0)),
                    pl.BlockSpec(w2.shape, lambda n: (0, 0)),
                    pl.BlockSpec(b2.shape, lambda n: (0, 0)),
                    pl.BlockSpec(ws.shape, lambda n: (0, 0)),
                    pl.BlockSpec(memory_space=pltpu.MemorySpace.SMEM),  # bs: scalar bias
                ],
                out_specs=pl.BlockSpec((nb, C, HWp), lambda n: (n, 0, 0)),
            ),
            compiler_params=pltpu.CompilerParams(
                dimension_semantics=("parallel",),
                vmem_limit_bytes=vmem_limit,
            ),
            cost_estimate=pl.CostEstimate(
                flops=6 * N * C * HWp,                   # mem-bound; flops nominal
                transcendentals=N * (HWp + C),           # sigmoids
                bytes_accessed=2 * N * C * HWp * itemsize,
            ),
        )(x, w1, b1, w2, b2, ws, bs)
    else:
        # ---- Two-pass HW-tiled fallback (large planes / forced for testing). ----
        lanes = HWp // 128
        per_lane_bytes = C * 128 * itemsize
        if hw_tile is not None:
            assert hw_tile % 128 == 0 and HWp % hw_tile == 0
            T = int(hw_tile)
        else:
            max_d_vmem = max((vmem_budget - headroom) // (4 * per_lane_bytes), 1)
            max_d_tgt = max((4 * 1024 * 1024) // per_lane_bytes, 1)
            max_d = int(min(max_d_vmem, max_d_tgt, lanes))
            d = 1
            for cand in range(max_d, 0, -1):
                if lanes % cand == 0:
                    d = cand
                    break
            T = 128 * d
        n_t = HWp // T
        tile_bytes = C * T * itemsize
        vmem_limit = int(min(vmem_budget,
                             max(32 * 1024 * 1024, 4 * tile_bytes + headroom)))

        # Pass 1: per-channel pooling + cSE gate.  Reads x once, writes only (N, C, 1).
        pool_kernel = functools.partial(_scse_pool_gate_kernel, inv_hw=inv_hw)
        s_gate = pl.pallas_call(
            pool_kernel,
            out_shape=jax.ShapeDtypeStruct((N, C, 1), jnp.float32),
            grid_spec=pltpu.PrefetchScalarGridSpec(
                num_scalar_prefetch=0,
                grid=(N, n_t),
                in_specs=[
                    pl.BlockSpec((1, C, T), lambda n, t: (n, 0, t)),
                    pl.BlockSpec(w1.shape, lambda n, t: (0, 0)),
                    pl.BlockSpec(b1.shape, lambda n, t: (0, 0)),
                    pl.BlockSpec(w2.shape, lambda n, t: (0, 0)),
                    pl.BlockSpec(b2.shape, lambda n, t: (0, 0)),
                ],
                out_specs=pl.BlockSpec((1, C, 1), lambda n, t: (n, 0, 0)),
            ),
            compiler_params=pltpu.CompilerParams(
                dimension_semantics=("parallel", "arbitrary"),
                vmem_limit_bytes=vmem_limit,
            ),
        )(x, w1, b1, w2, b2)

        # Pass 2: spatial gate + fused combine, HW-tiled, both axes parallel.
        out = pl.pallas_call(
            _scse_combine_kernel,
            out_shape=jax.ShapeDtypeStruct((N, C, HWp), dtype),
            grid_spec=pltpu.PrefetchScalarGridSpec(
                num_scalar_prefetch=0,
                grid=(N, n_t),
                in_specs=[
                    pl.BlockSpec((1, C, T), lambda n, t: (n, 0, t)),
                    pl.BlockSpec((1, C, 1), lambda n, t: (n, 0, 0)),
                    pl.BlockSpec(ws.shape, lambda n, t: (0, 0)),
                    pl.BlockSpec(memory_space=pltpu.MemorySpace.SMEM),  # bs
                ],
                out_specs=pl.BlockSpec((1, C, T), lambda n, t: (n, 0, t)),
            ),
            compiler_params=pltpu.CompilerParams(
                dimension_semantics=("parallel", "parallel"),
                vmem_limit_bytes=vmem_limit,
            ),
            cost_estimate=pl.CostEstimate(
                flops=4 * N * C * HWp,
                transcendentals=N * HWp,
                bytes_accessed=2 * N * C * HWp * itemsize,
            ),
        )(x, s_gate, ws, bs)

    if HWp != HW:
        out = out[:, :, :HW]
    # (N, C, HW) -> NCHW: contiguous reshape, no transpose.
    return out.reshape(N, C, H, W)


# --------------------------------------------------------------------------- reference


def scse_reference(x_nchw, params):
    """Pure-JAX reference with identical semantics to the PyTorch module."""
    w1, b1, w2, b2, ws, bs = params
    mean = jnp.mean(x_nchw, axis=(2, 3))                                 # (N, C)
    z = jnp.maximum(mean @ w1 + b1, 0.0)                                 # (N, Cr)
    s = jax.nn.sigmoid(z @ w2.T + b2[:, 0][None, :])                     # (N, C)
    cse = x_nchw * s[:, :, None, None]
    q = jax.nn.sigmoid(jnp.einsum("nchw,c->nhw", x_nchw, ws[:, 0]) + bs[0])
    sse = x_nchw * q[:, None, :, :]
    return cse + sse


def init_params(key, in_channels, reduction=16):
    """Deterministic synthetic parameters matching the module's 1x1 convs.

    Mapping from the PyTorch module:
      cSE conv1: weight (Cr, C, 1, 1) -> w1 stored transposed as (C, Cr); bias (Cr,) -> b1 (1, Cr)
      cSE conv2: weight (C, Cr, 1, 1) -> w2 stored as-is as (C, Cr);      bias (C,)  -> b2 (C, 1)
      sSE conv : weight (1, C, 1, 1)  -> ws stored as (C, 1);             bias (1,)  -> bs (1,)
    """
    cr = max(in_channels // reduction, 1)
    k1, k2, k3, k4, k5, k6 = jax.random.split(key, 6)
    w1 = jax.random.normal(k1, (in_channels, cr), jnp.float32) * 0.1
    b1 = jax.random.normal(k2, (1, cr), jnp.float32) * 0.1
    w2 = jax.random.normal(k3, (in_channels, cr), jnp.float32) * 0.1
    b2 = jax.random.normal(k4, (in_channels, 1), jnp.float32) * 0.1
    ws = jax.random.normal(k5, (in_channels, 1), jnp.float32) * 0.1
    bs = jax.random.normal(k6, (1,), jnp.float32) * 0.1
    return w1, b1, w2, b2, ws, bs


if __name__ == "__main__":
    key = jax.random.PRNGKey(0)
    kx, kx2, kp = jax.random.split(key, 3)

    N, C, H, W = 2, 32, 16, 16          # in_channels=32, reduction=16 -> hidden Cr = 2
    x = jax.random.normal(kx, (N, C, H, W), jnp.float32)
    params = init_params(kp, C, reduction=16)
    ref = scse_reference(x, params)

    # 1) default single-pass path (batched planes per grid step, lane-dense).
    out = jax.block_until_ready(scse_forward(x, params))
    assert out.shape == (N, C, H, W)
    assert jnp.allclose(out, ref, atol=1e-5, rtol=1e-5), "single-pass mismatch"

    # 2) two-pass HW-tiled fallback (forced) with multiple HW tiles per plane.
    out_t = jax.block_until_ready(scse_forward(x, params, force_tiled=True, hw_tile=128))
    assert jnp.allclose(out_t, ref, atol=1e-5, rtol=1e-5), "tiled-path mismatch"

    # 3) non-multiple-of-128 spatial size (7x7) -> exercises the lane-padding guard.
    x2 = jax.random.normal(kx2, (1, C, 7, 7), jnp.float32)
    out2 = jax.block_until_ready(scse_forward(x2, params))
    ref2 = scse_reference(x2, params)
    assert out2.shape == (1, C, 7, 7)
    assert jnp.allclose(out2, ref2, atol=1e-5, rtol=1e-5), "padded-HW mismatch"

    print("KERNEL_OK")
</pallas_src>

<mosaic_0001>
module attributes {stable_mosaic.version = 11 : i64} {
  func.func @_scse_fused_kernel(%arg0: i32, %arg1: memref<2x32x256xf32, #tpu.memory_space<vmem>>, %arg2: memref<32x2xf32, #tpu.memory_space<vmem>>, %arg3: memref<1x2xf32, #tpu.memory_space<vmem>>, %arg4: memref<32x2xf32, #tpu.memory_space<vmem>>, %arg5: memref<32x1xf32, #tpu.memory_space<vmem>>, %arg6: memref<32x1xf32, #tpu.memory_space<vmem>>, %arg7: memref<1xf32, #tpu.memory_space<smem>>, %arg8: memref<2x32x256xf32, #tpu.memory_space<vmem>>) attributes {dimension_semantics = [#tpu.dimension_semantics<parallel>], iteration_bounds = array<i64: 1>, scalar_prefetch = 0 : i64, scratch_operands = 0 : i64, tpu.core_type = #tpu.core_type<tc>, window_params = [{transform_indices = @transform_0, window_bounds = array<i64: 2, 32, 256>}, {pipeline_mode = #tpu.pipeline_mode<synchronous>, transform_indices = @transform_1, window_bounds = array<i64: 32, 2>}, {pipeline_mode = #tpu.pipeline_mode<synchronous>, transform_indices = @transform_2, window_bounds = array<i64: 1, 2>}, {pipeline_mode = #tpu.pipeline_mode<synchronous>, transform_indices = @transform_3, window_bounds = array<i64: 32, 2>}, {pipeline_mode = #tpu.pipeline_mode<synchronous>, transform_indices = @transform_4, window_bounds = array<i64: 32, 1>}, {pipeline_mode = #tpu.pipeline_mode<synchronous>, transform_indices = @transform_5, window_bounds = array<i64: 32, 1>}, {transform_indices = @transform_6, window_bounds = array<i64: 1>}, {transform_indices = @transform_7, window_bounds = array<i64: 2, 32, 256>}]} {
    %c0 = arith.constant 0 : index
    %c0_0 = arith.constant 0 : index
    %c0_1 = arith.constant 0 : index
    %0 = vector.load %arg1[%c0, %c0_0, %c0_1] : memref<2x32x256xf32, #tpu.memory_space<vmem>>, vector<2x32x256xf32>
    %cst = arith.constant dense<0.000000e+00> : vector<2x32xf32>
    %1 = vector.multi_reduction <add>, %0, %cst [2] : vector<2x32x256xf32> to vector<2x32xf32>
    %2 = vector.shape_cast %1 : vector<2x32xf32> to vector<2x32x1xf32>
    %cst_2 = arith.constant 3.906250e-03 : f32
    %3 = vector.broadcast %cst_2 : f32 to vector<2x32x1xf32>
    %4 = arith.mulf %2, %3 : vector<2x32x1xf32>
    %c0_3 = arith.constant 0 : index
    %c0_4 = arith.constant 0 : index
    %5 = vector.load %arg2[%c0_3, %c0_4] : memref<32x2xf32, #tpu.memory_space<vmem>>, vector<32x2xf32>
    %6 = vector.shape_cast %5 : vector<32x2xf32> to vector<1x32x2xf32>
    %7 = vector.broadcast %4 : vector<2x32x1xf32> to vector<2x32x2xf32>
    %8 = vector.broadcast %6 : vector<1x32x2xf32> to vector<2x32x2xf32>
    %9 = arith.mulf %7, %8 : vector<2x32x2xf32>
    %cst_5 = arith.constant dense<0.000000e+00> : vector<2x2xf32>
    %10 = vector.multi_reduction <add>, %9, %cst_5 [1] : vector<2x32x2xf32> to vector<2x2xf32>
    %11 = vector.shape_cast %10 : vector<2x2xf32> to vector<2x1x2xf32>
    %c0_6 = arith.constant 0 : index
    %c0_7 = arith.constant 0 : index
    %12 = vector.load %arg3[%c0_6, %c0_7] : memref<1x2xf32, #tpu.memory_space<vmem>>, vector<1x2xf32>
    %13 = vector.shape_cast %12 : vector<1x2xf32> to vector<1x1x2xf32>
    %14 = vector.broadcast %13 : vector<1x1x2xf32> to vector<2x1x2xf32>
    %15 = arith.addf %11, %14 : vector<2x1x2xf32>
    %cst_8 = arith.constant 0.000000e+00 : f32
    %16 = vector.broadcast %cst_8 : f32 to vector<2x1x2xf32>
    %17 = arith.maximumf %15, %16 : vector<2x1x2xf32>
    %c0_9 = arith.constant 0 : index
    %c0_10 = arith.constant 0 : index
    %18 = vector.load %arg4[%c0_9, %c0_10] : memref<32x2xf32, #tpu.memory_space<vmem>>, vector<32x2xf32>
    %19 = vector.shape_cast %18 : vector<32x2xf32> to vector<1x32x2xf32>
    %20 = vector.broadcast %17 : vector<2x1x2xf32> to vector<2x32x2xf32>
    %21 = vector.broadcast %19 : vector<1x32x2xf32> to vector<2x32x2xf32>
    %22 = arith.mulf %20, %21 : vector<2x32x2xf32>
    %cst_11 = arith.constant dense<0.000000e+00> : vector<2x32xf32>
    %23 = vector.multi_reduction <add>, %22, %cst_11 [2] : vector<2x32x2xf32> to vector<2x32xf32>
    %24 = vector.shape_cast %23 : vector<2x32xf32> to vector<2x32x1xf32>
    %c0_12 = arith.constant 0 : index
    %c0_13 = arith.constant 0 : index
    %25 = vector.load %arg5[%c0_12, %c0_13] : memref<32x1xf32, #tpu.memory_space<vmem>>, vector<32x1xf32>
    %26 = vector.shape_cast %25 : vector<32x1xf32> to vector<1x32x1xf32>
    %27 = vector.broadcast %26 : vector<1x32x1xf32> to vector<2x32x1xf32>
    %28 = arith.addf %24, %27 : vector<2x32x1xf32>
    %29 = arith.negf %28 : vector<2x32x1xf32>
    %30 = math.exp %29 : vector<2x32x1xf32>
    %cst_14 = arith.constant 1.000000e+00 : f32
    %31 = vector.broadcast %cst_14 : f32 to vector<2x32x1xf32>
    %32 = arith.addf %31, %30 : vector<2x32x1xf32>
    %33 = arith.divf %31, %32 : vector<2x32x1xf32>
    %c0_15 = arith.constant 0 : index
    %c0_16 = arith.constant 0 : index
    %c0_17 = arith.constant 0 : index
    %34 = vector.load %arg1[%c0_15, %c0_16, %c0_17] : memref<2x32x256xf32, #tpu.memory_space<vmem>>, vector<2x32x256xf32>
    %c0_18 = arith.constant 0 : index
    %c0_19 = arith.constant 0 : index
    %35 = vector.load %arg6[%c0_18, %c0_19] : memref<32x1xf32, #tpu.memory_space<vmem>>, vector<32x1xf32>
    %36 = vector.shape_cast %35 : vector<32x1xf32> to vector<1x32x1xf32>
    %37 = vector.broadcast %36 : vector<1x32x1xf32> to vector<2x32x256xf32>
    %38 = arith.mulf %34, %37 : vector<2x32x256xf32>
    %cst_20 = arith.constant dense<0.000000e+00> : vector<2x256xf32>
    %39 = vector.multi_reduction <add>, %38, %cst_20 [1] : vector<2x32x256xf32> to vector<2x256xf32>
    %40 = vector.shape_cast %39 : vector<2x256xf32> to vector<2x1x256xf32>
    %c0_21 = arith.constant 0 : index
    %41 = memref.load %arg7[%c0_21] : memref<1xf32, #tpu.memory_space<smem>>
    %42 = vector.broadcast %41 : f32 to vector<2x1x256xf32>
    %43 = arith.addf %40, %42 : vector<2x1x256xf32>
    %44 = arith.negf %43 : vector<2x1x256xf32>
    %45 = math.exp %44 : vector<2x1x256xf32>
    %cst_22 = arith.constant 1.000000e+00 : f32
    %46 = vector.broadcast %cst_22 : f32 to vector<2x1x256xf32>
    %47 = arith.addf %46, %45 : vector<2x1x256xf32>
    %48 = arith.divf %46, %47 : vector<2x1x256xf32>
    %c0_23 = arith.constant 0 : index
    %c0_24 = arith.constant 0 : index
    %c0_25 = arith.constant 0 : index
    %49 = vector.load %arg1[%c0_23, %c0_24, %c0_25] : memref<2x32x256xf32, #tpu.memory_space<vmem>>, vector<2x32x256xf32>
    %50 = vector.broadcast %33 : vector<2x32x1xf32> to vector<2x32x256xf32>
    %51 = vector.broadcast %48 : vector<2x1x256xf32> to vector<2x32x256xf32>
    %52 = arith.addf %50, %51 : vector<2x32x256xf32>
    %53 = arith.mulf %49, %52 : vector<2x32x256xf32>
    %c0_26 = arith.constant 0 : index
    %c0_27 = arith.constant 0 : index
    %c0_28 = arith.constant 0 : index
    %54 = vector.load %arg8[%c0_26, %c0_27, %c0_28] : memref<2x32x256xf32, #tpu.memory_space<vmem>>, vector<2x32x256xf32>
    tpu.vector_store %arg8[%c0_26, %c0_27, %c0_28], %53 {strides = array<i32>} : memref<2x32x256xf32, #tpu.memory_space<vmem>>, vector<2x32x256xf32>,
    return
  }
  func.func @transform_0(%arg0: i32) -> (i32, i32, i32) {
    %c0_i32 = arith.constant 0 : i32
    %c0_i32_0 = arith.constant 0 : i32
    %c0_i32_1 = arith.constant 0 : i32
    return %arg0, %c0_i32, %c0_i32_0 : i32, i32, i32
  }
  func.func @transform_1(%arg0: i32) -> (i32, i32) {
    %c0_i32 = arith.constant 0 : i32
    %c0_i32_0 = arith.constant 0 : i32
    %c0_i32_1 = arith.constant 0 : i32
    return %c0_i32, %c0_i32_0 : i32, i32
  }
  func.func @transform_2(%arg0: i32) -> (i32, i32) {
    %c0_i32 = arith.constant 0 : i32
    %c0_i32_0 = arith.constant 0 : i32
    %c0_i32_1 = arith.constant 0 : i32
    return %c0_i32, %c0_i32_0 : i32, i32
  }
  func.func @transform_3(%arg0: i32) -> (i32, i32) {
    %c0_i32 = arith.constant 0 : i32
    %c0_i32_0 = arith.constant 0 : i32
    %c0_i32_1 = arith.constant 0 : i32
    return %c0_i32, %c0_i32_0 : i32, i32
  }
  func.func @transform_4(%arg0: i32) -> (i32, i32) {
    %c0_i32 = arith.constant 0 : i32
    %c0_i32_0 = arith.constant 0 : i32
    %c0_i32_1 = arith.constant 0 : i32
    return %c0_i32, %c0_i32_0 : i32, i32
  }
  func.func @transform_5(%arg0: i32) -> (i32, i32) {
    %c0_i32 = arith.constant 0 : i32
    %c0_i32_0 = arith.constant 0 : i32
    %c0_i32_1 = arith.constant 0 : i32
    return %c0_i32, %c0_i32_0 : i32, i32
  }
  func.func @transform_6(%arg0: i32) -> i32 {
    %c0_i32 = arith.constant 0 : i32
    %c0_i32_0 = arith.constant 0 : i32
    return %c0_i32 : i32
  }
  func.func @transform_7(%arg0: i32) -> (i32, i32, i32) {
    %c0_i32 = arith.constant 0 : i32
    %c0_i32_0 = arith.constant 0 : i32
    %c0_i32_1 = arith.constant 0 : i32
    return %arg0, %c0_i32, %c0_i32_0 : i32, i32, i32
  }
}

</mosaic_0001>

<bundles_post_ra>
// kernel: tpu_custom_call.1
= control target key start
LH: loop header
LB: loop body
LE: loop exit
PB: predicated region body
PF: predicated region fallthrough
CT: control target
= control target key end

     0   :  { %s778_s0 = inlined_call_operand.vmem [shape: f32[2,32,256], index: 0, kind: input, shape index: {}]   ;;  %s779_s1 = inlined_call_operand.vmem [shape: f32[32,2], index: 1, kind: input, shape index: {}]   ;;  %s780_s2 = inlined_call_operand.vmem [shape: f32[1,2], index: 2, kind: input, shape index: {}]   ;;  %s781_s3 = inlined_call_operand.vmem [shape: f32[32,2], index: 3, kind: input, shape index: {}]   ;;  %s782_s4 = inlined_call_operand.vmem [shape: f32[32,1], index: 4, kind: input, shape index: {}]   ;;  %s783_s5 = inlined_call_operand.vmem [shape: f32[32,1], index: 5, kind: input, shape index: {}]   ;;  %s784_s6 = inlined_call_operand.<no memory space> [shape: f32[1], index: 6, kind: input, shape index: {}]   ;;  %s785_s7 = inlined_call_operand.hbm [shape: f32[2,32,256], index: 7, kind: output, shape index: {}]  }
   0x1   :  { %v571_v0 = vld [vmem:[%s778_s0] sm:$0xff]  ;;  %v576_v1 = vld [vmem:[%s778_s0 + $0x8] sm:$0xff]  ;;  %v593_v5 = vld [vmem:[%s778_s0 + $0x10] sm:$0xff] }
   0x2   :  { %v581_v2 = vld [vmem:[%s778_s0 + $0x40] sm:$0xff]  ;;  %v44_v3 = vadd.f32 %v576_v1, %v571_v0  ;;  %v588_v4 = vld [vmem:[%s778_s0 + $0x48] sm:$0xff]  ;;  %v598_v6 = vld [vmem:[%s778_s0 + $0x18] sm:$0xff] }
   0x3   :  { %v56_v7 = vadd.f32 %v588_v4, %v581_v2  ;;  %v605_v8 = vld [vmem:[%s778_s0 + $0x50] sm:$0xff]  ;;  %v610_v9 = vld [vmem:[%s778_s0 + $0x58] sm:$0xff]  ;;  %v47_v10 = vadd.f32 %v598_v6, %v593_v5  ;;  %v619_v12 = vld [vmem:[%s778_s0 + $0x20] sm:$0xff] }
   0x4   :  { %45 = vadd.xlane.f32.xlu0 %v44_v3  ;;  %v59_v11 = vadd.f32 %v610_v9, %v605_v8  ;;  %v624_v13 = vld [vmem:[%s778_s0 + $0x28] sm:$0xff]  ;;  %v629_v14 = vld [vmem:[%s778_s0 + $0x60] sm:$0xff] }
   0x5   :  { %57 = vadd.xlane.f32.xlu1 %v56_v7  ;;  %v634_v15 = vld [vmem:[%s778_s0 + $0x68] sm:$0xff] }
   0x6   :  { %13 = vsyncpa [#allocation4], 0  ;;  %v50_v16 = vadd.f32 %v624_v13, %v619_v12  ;;  %v62_v17 = vadd.f32 %v634_v15, %v629_v14  ;;  %v643_v18 = vld [vmem:[%s778_s0 + $0x30] sm:$0xff]  ;;  %v648_v19 = vld [vmem:[%s778_s0 + $0x38] sm:$0xff]  ;;  %v524_v24 = vmov 0   ;;  %vm88_vm0 = vcmask 15360  }
   0x7   :  { %v653_v20 = vld [vmem:[%s778_s0 + $0x70] sm:$0xff]  ;;  %v658_v21 = vld [vmem:[%s778_s0 + $0x78] sm:$0xff]  ;;  %v53_v22 = vadd.f32 %v648_v19, %v643_v18  ;;  %451 = vset.pattern.permute.xlu1 %v524_v24  ;;  %450 = vset.pattern.permute.xlu0 %v524_v24  ;;  %v76_v28 = vld [vmem:[%s779_s1] sm:$0xff]  ;;  %v124_v24 = vlaneseq }
   0x8   :  { %48 = vadd.xlane.f32.xlu0 %v47_v10  ;;  %v65_v23 = vadd.f32 %v658_v21, %v653_v20  ;;  %v77_v30 = vld [vmem:[%s779_s1 + $0x8] sm:$0xff]  ;;  %v78_v39 = vld [vmem:[%s779_s1 + $0x10] sm:$0xff]  ;;  %v79_v50 = vld [vmem:[%s779_s1 + $0x18] sm:$0xff] }
   0x9   :  { %60 = vadd.xlane.f32.xlu1 %v59_v11 }
   0xc   :  { %51 = vadd.xlane.f32.xlu0 %v50_v16 }
   0xd   :  { %63 = vadd.xlane.f32.xlu1 %v62_v17 }
  0x10   :  { %54 = vadd.xlane.f32.xlu0 %v53_v22 }
  0x11   :  { %66 = vadd.xlane.f32.xlu1 %v65_v23 }
  0x91   :  { %v46_v25 = vpop.xlane.xlu0 %45 }
  0x92   :  { %v58_v26 = vpop.xlane.xlu1 %57  ;;  %v68_v32 = vmul.f32 0.00390625, %v46_v25 }
  0x93   :  { %v72_v27 = vmul.f32 0.00390625, %v58_v26 }
  0x94   :  { %v80_v41 = vmul.f32 %v76_v28, %v68_v32 }
  0x95   :  { %v84_v29 = vmul.f32 %v76_v28, %v72_v27  ;;  %v49_v31 = vpop.xlane.xlu0 %48 }
  0x96   :  { %v69_v33 = vmul.f32 0.00390625, %v49_v31  ;;  %v61_v34 = vpop.xlane.xlu1 %60  ;;  %v89_v52 = vsel %vm88_vm0, %v80_v41, 0.0  ;;  %v115_v31 = vld [vmem:[%s780_s2] sm:$0x1] }
  0x97   :  { %v73_v35 = vmul.f32 0.00390625, %v61_v34  ;;  %v102_v37 = vsel %vm88_vm0, %v84_v29, 0.0  ;;  %v125_v29 = vshrl.u32 %v124_v24, 7 }
  0x98   :  { %v81_v36 = vmul.f32 %v77_v30, %v69_v33 }
  0x99   :  { %v85_v38 = vmul.f32 %v77_v30, %v73_v35  ;;  %v52_v40 = vpop.xlane.xlu0 %51  ;;  %v126_v35 = vsub.s32 0, %v125_v29 }
  0x9a   :  { %v70_v42 = vmul.f32 0.00390625, %v52_v40  ;;  %v64_v43 = vpop.xlane.xlu1 %63  ;;  %v90_v46 = vsel %vm88_vm0, %v81_v36, 0.0 }
  0x9b   :  { %v103_v44 = vsel %vm88_vm0, %v85_v38, 0.0  ;;  %v74_v45 = vmul.f32 0.00390625, %v64_v43  ;;  %v91_v56 = vadd.f32 %v90_v46, %v89_v52  ;;  %v121_v38 = vld [vmem:[%s781_s3 + $0x8] sm:$0xff]  ;;  %v122_v43 = vld [vmem:[%s781_s3 + $0x10] sm:$0xff] }
  0x9c   :  { %v104_v47 = vadd.f32 %v103_v44, %v102_v37  ;;  %v82_v48 = vmul.f32 %v78_v39, %v70_v42  ;;  %v123_v42 = vld [vmem:[%s781_s3 + $0x18] sm:$0xff] }
  0x9d   :  { %v86_v49 = vmul.f32 %v78_v39, %v74_v45  ;;  %v55_v51 = vpop.xlane.xlu0 %54  ;;  %v120_v39 = vld [vmem:[%s781_s3] sm:$0xff] }
  0x9e   :  { %v92_v53 = vsel %vm88_vm0, %v82_v48, 0.0  ;;  %v71_v54 = vmul.f32 0.00390625, %v55_v51  ;;  %v67_v55 = vpop.xlane.xlu1 %66 }
  0x9f   :  { %v105_v57 = vsel %vm88_vm0, %v86_v49, 0.0  ;;  %v75_v58 = vmul.f32 0.00390625, %v67_v55  ;;  %v93_v61 = vadd.f32 %v92_v53, %v91_v56 }
  0xa0   :  { %v106_v59 = vadd.f32 %v105_v57, %v104_v47  ;;  %v83_v60 = vmul.f32 %v79_v50, %v71_v54 }
  0xa1   :  { %v87_v62 = vmul.f32 %v79_v50, %v75_v58 }
  0xa2   :  { %v94_v63 = vsel %vm88_vm0, %v83_v60, 0.0 }
  0xa3   :  { %v95_v3 = vadd.f32 %v94_v63, %v93_v61  ;;  %v107_v7 = vsel %vm88_vm0, %v87_v62, 0.0  ;;  %v225_v61 = vld [vmem:[%s783_s5 + $0x8] sm:$0xff]  ;;  %v226_v62 = vld [vmem:[%s783_s5 + $0x10] sm:$0xff]  ;;  %v224_v63 = vld [vmem:[%s783_s5] sm:$0xff] }
  0xa4   :  { %v108_v10 = vadd.f32 %v107_v7, %v106_v59  ;;  %v165_v7 = vld [vmem:[%s782_s4 + $0x8] sm:$0xff] }
  0xa5   :  { %v96_v11 = vrot.slane %v95_v3, 4 }
  0xa6   :  { %v109_v16 = vrot.slane %v108_v10, 4 }
  0xa7   :  { %v97_v17 = vadd.f32 %v96_v11, %v95_v3  ;;  %v227_v3 = vld [vmem:[%s783_s5 + $0x18] sm:$0xff] }
  0xa8   :  { %v110_v22 = vadd.f32 %v109_v16, %v108_v10  ;;  %v164_v10 = vld [vmem:[%s782_s4] sm:$0xff] }
  0xa9   :  { %v98_v23 = vrot.slane %v97_v17, 2 }
  0xaa   :  { %v111_v25 = vrot.slane %v110_v22, 2 }
  0xab   :  { %v99_v26 = vadd.f32 %v98_v23, %v97_v17  ;;  %v166_v23 = vld [vmem:[%s782_s4 + $0x10] sm:$0xff] }
  0xac   :  { %v112_v27 = vadd.f32 %v111_v25, %v110_v22 }
  0xad   :  { %v100_v28 = vrot.slane %v99_v26, 1 }
  0xae   :  { %v113_v30 = vrot.slane %v112_v27, 1 }
  0xaf   :  { %v101_v32 = vadd.f32 %v100_v28, %v99_v26  ;;  %v167_v26 = vld [vmem:[%s782_s4 + $0x18] sm:$0xff] }
  0xb0   :  { %v114_v33 = vadd.f32 %v113_v30, %v112_v27 }
  0xb1   :  { %v116_v34 = vadd.f32 %v115_v31, %v101_v32 }
  0xb2   :  { %v117_v36 = vadd.f32 %v115_v31, %v114_v33 }
  0xb3   :  { %v118_v37 = vmax.f32 %v116_v34, 0.0 }
  0xb4   :  { %v119_v40 = vmax.f32 %v117_v36, 0.0 }
  0xb5   :  { %v127_v41 = vrot.slane %v118_v37, %v126_v35 }
  0xb6   :  { %v131_v46 = vrot.slane %v119_v40, %v126_v35 }
  0xb7   :  { %v133_v44 = vmul.f32 %v127_v41, %v121_v38  ;;  %v132_v45 = vmul.f32 %v127_v41, %v120_v39  ;;  %v135_v49 = vmul.f32 %v127_v41, %v123_v42  ;;  %v134_v50 = vmul.f32 %v127_v41, %v122_v43 }
  0xb8   :  { %v137_v53 = vmul.f32 %v131_v46, %v121_v38  ;;  %v136_v54 = vmul.f32 %v131_v46, %v120_v39  ;;  %v139_v57 = vmul.f32 %v131_v46, %v123_v42  ;;  %v138_v58 = vmul.f32 %v131_v46, %v122_v43 }
  0xb9   :  { %v143_v47 = vsel %vm88_vm0, %v133_v44, 0.0  ;;  %v140_v48 = vsel %vm88_vm0, %v132_v45, 0.0  ;;  %v149_v51 = vsel %vm88_vm0, %v135_v49, 0.0  ;;  %v146_v52 = vsel %vm88_vm0, %v134_v50, 0.0 }
  0xba   :  { %144 = vadd.xlane.f32.xlu1 %v143_v47  ;;  %141 = vadd.xlane.f32.xlu0 %v140_v48  ;;  %v155_v55 = vsel %vm88_vm0, %v137_v53, 0.0  ;;  %v152_v56 = vsel %vm88_vm0, %v136_v54, 0.0  ;;  %v161_v59 = vsel %vm88_vm0, %v139_v57, 0.0  ;;  %v158_v60 = vsel %vm88_vm0, %v138_v58, 0.0 }
  0xbe   :  { %150 = vadd.xlane.f32.xlu1 %v149_v51  ;;  %147 = vadd.xlane.f32.xlu0 %v146_v52 }
  0xc2   :  { %156 = vadd.xlane.f32.xlu1 %v155_v55  ;;  %153 = vadd.xlane.f32.xlu0 %v152_v56 }
  0xc6   :  { %162 = vadd.xlane.f32.xlu1 %v161_v59  ;;  %159 = vadd.xlane.f32.xlu0 %v158_v60 }
  0xd7   :  { %235 = vperm.xlu1 %451, %v225_v61  }
  0xdb   :  { %240 = vperm.xlu1 %451, %v226_v62  }
  0xdc   :  { %230 = vperm.xlu0 %450, %v224_v63  }
  0xdf   :  { %245 = vperm.xlu1 %451, %v227_v3  }
 0x147   :  { %v145_v11 = vpop.xlane.xlu1 %144  ;;  %v142_v16 = vpop.xlane.xlu0 %141 }
 0x148   :  { %v169_v17 = vadd.f32 %v165_v7, %v145_v11  ;;  %v168_v22 = vadd.f32 %v164_v10, %v142_v16 }
 0x14a   :  { %v435_v24 = vmul.f32 -1.442695, %v169_v17  ;;  %v434_v25 = vmul.f32 -1.442695, %v168_v22 }
 0x14b   :  { %v151_v27 = vpop.xlane.xlu1 %150  ;;  %v148_v28 = vpop.xlane.xlu0 %147 }
 0x14c   :  { %452 = vpow2.f32 %v435_v24  ;;  %v170_v29 = vadd.f32 %v166_v23, %v148_v28  ;;  %v171_v30 = vadd.f32 %v167_v26, %v151_v27 }
 0x14d   :  { %454 = vpow2.f32 %v434_v25 }
 0x14e   :  { %v436_v31 = vmul.f32 -1.442695, %v170_v29  ;;  %v437_v35 = vmul.f32 -1.442695, %v171_v30 }
 0x14f   :  { %v157_v32 = vpop.xlane.xlu1 %156  ;;  %v154_v33 = vpop.xlane.xlu0 %153 }
 0x150   :  { %v173_v34 = vadd.f32 %v165_v7, %v157_v32  ;;  %456 = vpow2.f32 %v436_v31  ;;  %v172_v36 = vadd.f32 %v164_v10, %v154_v33 }
 0x152   :  { %v439_v37 = vmul.f32 -1.442695, %v173_v34  ;;  %v438_v41 = vmul.f32 -1.442695, %v172_v36 }
 0x153   :  { %v163_v38 = vpop.xlane.xlu1 %162  ;;  %v160_v39 = vpop.xlane.xlu0 %159 }
 0x154   :  { %458 = vpow2.f32 %v439_v37  ;;  %v175_v40 = vadd.f32 %v167_v26, %v163_v38  ;;  %v174_v42 = vadd.f32 %v166_v23, %v160_v39 }
 0x155   :  { %460 = vpow2.f32 %v437_v35 }
 0x156   :  { %v453_v43 = vpop.eup %452  ;;  %v441_v44 = vmul.f32 -1.442695, %v175_v40  ;;  %v440_v47 = vmul.f32 -1.442695, %v174_v42 }
 0x157   :  { %v455_v45 = vpop.eup %454  ;;  %v201_v48 = vadd.f32 1.0, %v453_v43  ;;  %v236_v17 = vpop.permute.xlu1 %235 }
 0x158   :  { %v200_v46 = vadd.f32 1.0, %v455_v45  ;;  %462 = vpow2.f32 %v441_v44  ;;  %v250_v24 = vmul.f32 %v236_v17, %v593_v5  ;;  %v251_v26 = vmul.f32 %v236_v17, %v598_v6 }
 0x159   :  { %464 = vpow2.f32 %v438_v41  ;;  %v258_v35 = vmul.f32 %v236_v17, %v605_v8  ;;  %v259_v39 = vmul.f32 %v236_v17, %v610_v9 }
 0x15a   :  { %466 = vrcp.f32 %v200_v46  ;;  %v457_v49 = vpop.eup %456 }
 0x15b   :  { %468 = vpow2.f32 %v440_v47  ;;  %v202_v51 = vadd.f32 1.0, %v457_v49  ;;  %v231_v22 = vpop.permute.xlu0 %230  ;;  %v241_v23 = vpop.permute.xlu1 %240 }
 0x15c   :  { %470 = vrcp.f32 %v201_v48  ;;  %v248_v25 = vmul.f32 %v231_v22, %v571_v0  ;;  %v249_v27 = vmul.f32 %v231_v22, %v576_v1  ;;  %v252_v28 = vmul.f32 %v241_v23, %v619_v12 }
 0x15d   :  { %v253_v30 = vmul.f32 %v241_v23, %v624_v13  ;;  %v256_v36 = vmul.f32 %v231_v22, %v581_v2  ;;  %v257_v40 = vmul.f32 %v231_v22, %v588_v4  ;;  %v260_v42 = vmul.f32 %v241_v23, %v629_v14 }
 0x15e   :  { %v459_v50 = vpop.eup %458  ;;  %v264_v29 = vadd.f32 %v250_v24, %v248_v25  ;;  %v273_v31 = vadd.f32 %v251_v26, %v249_v27  ;;  %v261_v45 = vmul.f32 %v241_v23, %v634_v15  ;;  %v301_v22 = vstv %s784_s6  ;;  %s525_s6 = smov [#allocation3]  }
 0x15f   :  { %v461_v52 = vpop.eup %460  ;;  %v205_v53 = vadd.f32 1.0, %v459_v50  ;;  %v246_v32 = vpop.permute.xlu1 %245  ;;  %v282_v43 = vadd.f32 %v258_v35, %v256_v36  ;;  %v291_v46 = vadd.f32 %v259_v39, %v257_v40  ;;  %s423_s16 = sshll.u32 %s525_s6, 4  ;;  %s424_s16 = int_to_ptr.vmem [resolvable:$true] %s423_s16 }
 0x160   :  { %v203_v55 = vadd.f32 1.0, %v461_v52  ;;  %v254_v33 = vmul.f32 %v246_v32, %v643_v18  ;;  %v265_v34 = vadd.f32 %v264_v29, %v252_v28  ;;  %v255_v37 = vmul.f32 %v246_v32, %v648_v19  ;;  %s500_s1 = scalar_lea.vmem %s424_s16, 2048  ;;  %p505_p1 = scmp.lt.s32.totalorder %s424_s16, %s424_s16 }
 0x161   :  { %472 = vrcp.f32 %v205_v53  ;;  %v274_v38 = vadd.f32 %v273_v31, %v253_v30  ;;  %v262_v48 = vmul.f32 %v246_v32, %v653_v20  ;;  %v283_v50 = vadd.f32 %v282_v43, %v260_v42  ;;  %p501_p0 = scmp.ne.s32.totalorder %s424_s16, %s500_s1  ;;  %p506_p2 = scmp.lt.s32.totalorder %s500_s1, %s500_s1 }
 0x162   :  { %v463_v54 = vpop.eup %462  ;;  %474 = vrcp.f32 %v202_v51  ;;  %v266_v41 = vadd.f32 %v265_v34, %v254_v33  ;;  %v263_v51 = vmul.f32 %v246_v32, %v658_v21  ;;  %v292_v52 = vadd.f32 %v291_v46, %v261_v45 }
 0x163   :  { %v465_v56 = vpop.eup %464  ;;  %v207_v57 = vadd.f32 1.0, %v463_v54  ;;  %v275_v44 = vadd.f32 %v274_v38, %v255_v37  ;;  %p507_p3 = por %p506_p2, %p505_p1 }
 0x164   :  { %v467_v58 = vpop.eup %466  ;;  %v204_v59 = vadd.f32 1.0, %v465_v56  ;;  %v267_v47 = vrot.slane %v266_v41, 4  ;;  %v293_v56 = vadd.f32 %v292_v52, %v263_v51 }
 0x165   :  { %476 = vrcp.f32 %v207_v57  ;;  %332 = vperm.xlu1 %451, %v467_v58   ;;  %v469_v60 = vpop.eup %468  ;;  %v276_v49 = vrot.slane %v275_v44, 4  ;;  %p508_p4 = pnand %p507_p3, %p501_p0 }
 0x166   :  { %478 = vrcp.f32 %v203_v55  ;;  %v471_v61 = vpop.eup %470  ;;  %v206_v62 = vadd.f32 1.0, %v469_v60  ;;  %v268_v53 = vadd.f32 %v267_v47, %v266_v41  ;;  %v284_v55 = vadd.f32 %v283_v50, %v262_v48 }
 0x167   :  { %480 = vrcp.f32 %v204_v59  ;;  %v277_v54 = vadd.f32 %v276_v49, %v275_v44  ;;  %v294_v60 = vrot.slane %v293_v56, 4 }
 0x168   :  { %482 = vrcp.f32 %v206_v62  ;;  %v269_v57 = vrot.slane %v268_v53, 2  ;;  %v285_v59 = vrot.slane %v284_v55, 4 }
 0x169   :  { %337 = vperm.xlu1 %451, %v471_v61   ;;  %v278_v58 = vrot.slane %v277_v54, 2 }
 0x16a   :  { %v270_v61 = vadd.f32 %v269_v57, %v268_v53 }
 0x16b   :  { %v473_v63 = vpop.eup %472  ;;  %v279_v62 = vadd.f32 %v278_v58, %v277_v54 }
 0x16c   :  { %v475_v3 = vpop.eup %474  ;;  %357 = vperm.xlu0 %450, %v473_v63   ;;  %v286_v63 = vadd.f32 %v285_v59, %v284_v55 }
 0x16d   :  { %342 = vperm.xlu1 %451, %v475_v3   ;;  %v295_v3 = vadd.f32 %v294_v60, %v293_v56 }
 0x16f   :  { %v477_v7 = vpop.eup %476 }
 0x170   :  { %v479_v10 = vpop.eup %478  ;;  %367 = vperm.xlu0 %450, %v477_v7   ;;  %v271_v7 = vrot.slane %v270_v61, 1 }
 0x171   :  { %347 = vperm.xlu1 %451, %v479_v10   ;;  %v481_v11 = vpop.eup %480  ;;  %v280_v10 = vrot.slane %v279_v62, 1 }
 0x172   :  { %v483_v16 = vpop.eup %482  ;;  %v272_v17 = vadd.f32 %v271_v7, %v270_v61 }
 0x173   :  { %v281_v23 = vadd.f32 %v280_v10, %v279_v62 }
 0x174   :  { %v302_v26 = vadd.f32 %v301_v22, %v272_v17 }
 0x175   :  { %352 = vperm.xlu1 %451, %v481_v11   ;;  %v287_v11 = vrot.slane %v286_v63, 2  ;;  %v303_v28 = vadd.f32 %v301_v22, %v281_v23 }
 0x176   :  { %v442_v30 = vmul.f32 -1.442695, %v302_v26 }
 0x177   :  { %v288_v24 = vadd.f32 %v287_v11, %v286_v63  ;;  %v443_v32 = vmul.f32 -1.442695, %v303_v28 }
 0x178   :  { %484 = vpow2.f32 %v442_v30 }
 0x179   :  { %362 = vperm.xlu1 %451, %v483_v16   ;;  %v296_v16 = vrot.slane %v295_v3, 2  ;;  %v289_v27 = vrot.slane %v288_v24, 1  ;;  %486 = vpow2.f32 %v443_v32 }
 0x17b   :  { %v297_v25 = vadd.f32 %v296_v16, %v295_v3  ;;  %v290_v31 = vadd.f32 %v289_v27, %v288_v24 }
 0x17d   :  { %v298_v29 = vrot.slane %v297_v25, 1  ;;  %v304_v34 = vadd.f32 %v301_v22, %v290_v31 }
 0x17f   :  { %v299_v33 = vadd.f32 %v298_v29, %v297_v25  ;;  %v444_v36 = vmul.f32 -1.442695, %v304_v34 }
 0x181   :  { %v305_v35 = vadd.f32 %v301_v22, %v299_v33  ;;  %488 = vpow2.f32 %v444_v36 }
 0x182   :  { %v485_v38 = vpop.eup %484 }
 0x183   :  { %v445_v37 = vmul.f32 -1.442695, %v305_v35  ;;  %v487_v39 = vpop.eup %486  ;;  %v318_v40 = vadd.f32 1.0, %v485_v38 }
 0x184   :  { %v319_v41 = vadd.f32 1.0, %v487_v39 }
 0x185   :  { %490 = vpow2.f32 %v445_v37 }
 0x186   :  { %492 = vrcp.f32 %v318_v40 }
 0x187   :  { %494 = vrcp.f32 %v319_v41 }
 0x18b   :  { %v489_v42 = vpop.eup %488 }
 0x18c   :  { %v320_v44 = vadd.f32 1.0, %v489_v42 }
 0x18e   :  { %496 = vrcp.f32 %v320_v44 }
 0x18f   :  { %v491_v43 = vpop.eup %490 }
 0x190   :  { %v321_v45 = vadd.f32 1.0, %v491_v43  ;;  %v493_v46 = vpop.eup %492 }
 0x191   :  { %v495_v47 = vpop.eup %494 }
 0x192   :  { %498 = vrcp.f32 %v321_v45 }
 0x198   :  { %v497_v56 = vpop.eup %496 }
 0x19c   :  { %v499_v57 = vpop.eup %498 }
 0x1e4   :  { %v333_v48 = vpop.permute.xlu1 %332 }
 0x1e5   :  { %v370_v49 = vadd.f32 %v493_v46, %v333_v48  ;;  %v371_v50 = vadd.f32 %v495_v47, %v333_v48 }
 0x1e7   :  { %v386_v51 = vmul.f32 %v370_v49, %v571_v0  ;;  %v387_v52 = vmul.f32 %v371_v50, %v576_v1 }
 0x1e8   :  { %v338_v53 = vpop.permute.xlu1 %337 }
 0x1e9   :  { %402 = vst [vmem:[#allocation3] sm:$0xff] %v386_v51  ;;  %403 = vst [vmem:[#allocation3 + $0x8] sm:$0xff] %v387_v52  ;;  %v372_v54 = vadd.f32 %v493_v46, %v338_v53  ;;  %v373_v55 = vadd.f32 %v495_v47, %v338_v53 }
 0x1eb   :  { %v388_v58 = vmul.f32 %v372_v54, %v593_v5  ;;  %v389_v59 = vmul.f32 %v373_v55, %v598_v6  ;;  %v358_v60 = vpop.permute.xlu0 %357 }
 0x1ec   :  { %v343_v61 = vpop.permute.xlu1 %342  ;;  %v380_v62 = vadd.f32 %v497_v56, %v358_v60  ;;  %v381_v63 = vadd.f32 %v499_v57, %v358_v60 }
 0x1ed   :  { %404 = vst [vmem:[#allocation3 + $0x10] sm:$0xff] %v388_v58  ;;  %405 = vst [vmem:[#allocation3 + $0x18] sm:$0xff] %v389_v59  ;;  %v374_v0 = vadd.f32 %v493_v46, %v343_v61  ;;  %v375_v3 = vadd.f32 %v495_v47, %v343_v61 }
 0x1ee   :  { %v396_v1 = vmul.f32 %v380_v62, %v605_v8  ;;  %v397_v7 = vmul.f32 %v381_v63, %v610_v9 }
 0x1ef   :  { %v390_v10 = vmul.f32 %v374_v0, %v619_v12  ;;  %v391_v11 = vmul.f32 %v375_v3, %v624_v13  ;;  %v368_v16 = vpop.permute.xlu0 %367 }
 0x1f0   :  { %412 = vst [vmem:[#allocation3 + $0x50] sm:$0xff] %v396_v1  ;;  %413 = vst [vmem:[#allocation3 + $0x58] sm:$0xff] %v397_v7  ;;  %v348_v5 = vpop.permute.xlu1 %347  ;;  %v384_v6 = vadd.f32 %v497_v56, %v368_v16  ;;  %v385_v17 = vadd.f32 %v499_v57, %v368_v16 }
 0x1f1   :  { %406 = vst [vmem:[#allocation3 + $0x20] sm:$0xff] %v390_v10  ;;  %407 = vst [vmem:[#allocation3 + $0x28] sm:$0xff] %v391_v11  ;;  %v376_v22 = vadd.f32 %v493_v46, %v348_v5  ;;  %v377_v23 = vadd.f32 %v495_v47, %v348_v5 }
 0x1f2   :  { %v400_v24 = vmul.f32 %v384_v6, %v653_v20  ;;  %v401_v8 = vmul.f32 %v385_v17, %v658_v21 }
 0x1f3   :  { %v392_v9 = vmul.f32 %v376_v22, %v643_v18  ;;  %v393_v12 = vmul.f32 %v377_v23, %v648_v19 }
 0x1f4   :  { %416 = vst [vmem:[#allocation3 + $0x70] sm:$0xff] %v400_v24  ;;  %417 = vst [vmem:[#allocation3 + $0x78] sm:$0xff] %v401_v8  ;;  %v353_v13 = vpop.permute.xlu1 %352 }
 0x1f5   :  { %408 = vst [vmem:[#allocation3 + $0x30] sm:$0xff] %v392_v9  ;;  %409 = vst [vmem:[#allocation3 + $0x38] sm:$0xff] %v393_v12  ;;  %v378_v25 = vadd.f32 %v497_v56, %v353_v13  ;;  %v379_v26 = vadd.f32 %v499_v57, %v353_v13 }
 0x1f7   :  { %v394_v27 = vmul.f32 %v378_v25, %v581_v2  ;;  %v395_v28 = vmul.f32 %v379_v26, %v588_v4 }
 0x1f8   :  { %v363_v29 = vpop.permute.xlu1 %362 }
 0x1f9   :  { %410 = vst [vmem:[#allocation3 + $0x40] sm:$0xff] %v394_v27  ;;  %411 = vst [vmem:[#allocation3 + $0x48] sm:$0xff] %v395_v28  ;;  %v382_v20 = vadd.f32 %v497_v56, %v363_v29  ;;  %v383_v18 = vadd.f32 %v499_v57, %v363_v29 }
 0x1fb   :  { %v398_v19 = vmul.f32 %v382_v20, %v629_v14  ;;  %v399_v21 = vmul.f32 %v383_v18, %v634_v15 }
 0x1fd   :  { %414 = vst [vmem:[#allocation3 + $0x60] sm:$0xff] %v398_v19  ;;  %415 = vst [vmem:[#allocation3 + $0x68] sm:$0xff] %v399_v21 }
 0x1fe   :  { %511 = shalt.err (!%p508_p4)
}
 0x1ff   :  { %s512_s19 = scalar_lea.hbm %s785_s7, 2048 }
 0x200   :  { %p513_p5 = scmp.ne.s32.totalorder %s785_s7, %s512_s19  ;;  %p516_p6 = scmp.lt.u32.totalorder %s512_s19, %s785_s7 }
 0x202   :  { %p518_p7 = pnand %p516_p6, %p513_p5 }
 0x204   :  { %521 = shalt.err (!%p518_p7)
}
 0x205   :  { %s526_s2 = smov 256   ;;  %s527_s24 = smov 16  }
 0x206   :  { %429 = dma.vmem_to_hbm [thread:$0]  %s424_s16, 2048, %s785_s7, [#allocation4], %s526_s2, %s526_s2, %s527_s24  }
 0x207   :  { %522 = dma.done.wait [#allocation4], 2048  }
 0x208   :  { %523 = vsyncadd [#allocation4], 4294965248 }
 0x209   :  { %433 = vsyncpa [#allocation4], 1 }

</bundles_post_ra>
